<compile_context>
chip_gen: v6e
topology: v6e:2x2x1
jax: 0.10.0
libtpu: 0.0.40
codegen_flags: <defaults>
</compile_context>

<pallas_src>
import jax
import jax.numpy as jnp
from jax.experimental import pallas as pl
from jax.experimental.pallas import tpu as pltpu


def _round_up(v, m):
    return (v + m - 1) // m * m


def _sublane_multiple(dtype):
    # Rows per packed sublane group: f32 -> 8, bf16 -> 16, int8/fp8 -> 32.
    return 8 * (4 // jnp.dtype(dtype).itemsize)


def _csl_kernel(x_ref, wl_ref, gc_ref, out_ref):
    # x_ref  : (1, TN, K)    activation tile (compute dtype, e.g. bf16)
    # wl_ref : (K, TO)       layer weight tile (compute dtype), single-buffered
    # gc_ref : (1, 2, TO)    f32; row 0 = gate, row 1 = b_layer*gate + hyper_bias
    # out_ref: (1, TN, TO)
    h = jnp.dot(x_ref[0], wl_ref[...], preferred_element_type=jnp.float32)
    gc = gc_ref[0]                                   # (2, TO) f32
    # Single FMA epilogue in f32, cast only at the final store.
    out_ref[0] = (h * gc[0:1, :] + gc[1:2, :]).astype(out_ref.dtype)


def prepare_csl_params(w_layer, b_layer, w_gate, b_gate, w_bias, *,
                       compute_dtype=jnp.bfloat16):
    """One-time parameter prep (parameter-load time, not per forward).

    Inputs follow PyTorch convention: w_layer (dim_out, dim_in), w_gate/w_bias
    (dim_out, dim_ctx), biases (dim_out,).  Weights are transposed once to
    (K, dim_out) layout and dim_out is padded to a multiple of 128 so the
    kernel output is lane-dense.  compute_dtype=None keeps the exact f32 path.
    """
    dim_out, dim_in = w_layer.shape
    dim_out_p = _round_up(dim_out, 128)
    pad_o = dim_out_p - dim_out

    wl_t = jnp.pad(jnp.asarray(w_layer, jnp.float32).T, ((0, 0), (0, pad_o)))
    wg_t = jnp.pad(jnp.asarray(w_gate, jnp.float32).T, ((0, 0), (0, pad_o)))
    wb_t = jnp.pad(jnp.asarray(w_bias, jnp.float32).T, ((0, 0), (0, pad_o)))
    bl = jnp.pad(jnp.asarray(b_layer, jnp.float32), (0, pad_o)).reshape(1, dim_out_p)
    bg = jnp.pad(jnp.asarray(b_gate, jnp.float32), (0, pad_o)).reshape(1, dim_out_p)

    if compute_dtype is None:
        compute_dtype = jnp.float32
    wl_t = wl_t.astype(compute_dtype)   # MXU operand; accumulation stays f32

    return dict(wl_t=wl_t, wg_t=wg_t, wb_t=wb_t, bl=bl, bg=bg,
                dim_out=dim_out, dim_out_p=dim_out_p,
                compute_dtype=jnp.dtype(compute_dtype))


def concat_squash_linear(ctx, x, params, *, tile_n=1024, tile_o=512,
                         out_dtype=None, min_grid_steps=16):
    """ctx: (B, 1, dim_ctx); x: (B, N, dim_in). Returns (B, N, dim_out)."""
    B, N, dim_in = x.shape
    dim_out = params["dim_out"]
    dim_out_p = params["dim_out_p"]
    compute_dtype = params["compute_dtype"]
    wl_t = params["wl_t"]
    out_dtype = jnp.dtype(out_dtype) if out_dtype is not None else x.dtype

    # --- Hyper-network hoisted to the wrapper: one tiny batched matmul pair,
    #     folded into a single fused (gate, comb) operand in f32.
    c = ctx[:, 0, :].astype(jnp.float32)                        # (B, dim_ctx)
    gate = jax.nn.sigmoid(c @ params["wg_t"] + params["bg"])    # (B, dim_out_p)
    comb = params["bl"] * gate + c @ params["wb_t"]             # (B, dim_out_p)
    gatecomb = jnp.stack([gate, comb], axis=1)                  # (B, 2, dim_out_p)

    x_in = x.astype(compute_dtype)
    w_itemsize = jnp.dtype(compute_dtype).itemsize

    # --- dim_out tiling: only when the weight tile would be large (v7x 64 MiB
    #     VMEM).  TILE_O stays a multiple of 128 -> lane-dense stores.
    to_cand = _round_up(min(tile_o, dim_out_p), 128)
    if dim_in * dim_out_p * w_itemsize > (8 << 20) and dim_out_p % to_cand == 0:
        to = to_cand
    else:
        to = dim_out_p
    o_tiles = dim_out_p // to

    # --- N tiling: dtype-aware sublane rounding (bf16 packs 2 rows/sublane).
    sub = max(_sublane_multiple(compute_dtype), _sublane_multiple(out_dtype))
    tn = _round_up(min(tile_n, _round_up(N, sub)), sub)
    # v7x megacore / pipeline ramp: ensure enough grid steps; shrink tn if not.
    while B * pl.cdiv(N, tn) * o_tiles < min_grid_steps and tn > 2 * sub:
        tn = _round_up(pl.cdiv(tn, 2), sub)
    n_pad = _round_up(N, tn)
    if n_pad != N:
        x_in = jnp.pad(x_in, ((0, 0), (0, n_pad - N), (0, 0)))
    n_tiles = n_pad // tn

    # --- VMEM budget derived from the actual tiles (+ slack), not the default.
    x_tile_b = tn * dim_in * jnp.dtype(compute_dtype).itemsize
    out_tile_b = tn * to * jnp.dtype(out_dtype).itemsize
    w_tile_b = dim_in * to * w_itemsize            # single-buffered
    gc_b = 2 * dim_out_p * 4                       # single-buffered
    vmem_needed = 2 * x_tile_b + 2 * out_tile_b + w_tile_b + gc_b
    vmem_limit = int(min(max(int(vmem_needed * 1.5) + (4 << 20), 32 << 20),
                         100 << 20))

    cost = pl.CostEstimate(
        flops=2 * B * n_pad * dim_in * dim_out_p,
        transcendentals=0,
        bytes_accessed=(x_in.size * x_in.dtype.itemsize
                        + wl_t.size * wl_t.dtype.itemsize
                        + gatecomb.size * 4
                        + B * n_pad * dim_out_p * jnp.dtype(out_dtype).itemsize),
    )

    grid = (B, o_tiles, n_tiles)   # n innermost: x tile is not re-fetched per o
    out = pl.pallas_call(
        _csl_kernel,
        out_shape=jax.ShapeDtypeStruct((B, n_pad, dim_out_p), out_dtype),
        grid=grid,
        in_specs=[
            # x tile: default double-buffering (it changes every step).
            pl.BlockSpec((1, tn, dim_in), lambda b, o, n: (b, n, 0)),
            # Layer weight tile: invariant along n (and b) -> single-buffered.
            pl.BlockSpec((dim_in, to), lambda b, o, n: (0, o),
                         pipeline_mode=pl.Buffered(1)),
            # Fused (gate, comb): tiny, per-batch -> single-buffered.
            pl.BlockSpec((1, 2, to), lambda b, o, n: (b, 0, o),
                         pipeline_mode=pl.Buffered(1)),
        ],
        out_specs=pl.BlockSpec((1, tn, to), lambda b, o, n: (b, n, o)),
        compiler_params=pltpu.CompilerParams(
            dimension_semantics=("parallel", "parallel", "parallel"),
            vmem_limit_bytes=vmem_limit),
        cost_estimate=cost,
    )(x_in, wl_t, gatecomb)

    if n_pad != N or dim_out_p != dim_out:
        # NOTE: this slice is an extra HBM read+write in XLA.  Keep dim_out a
        # multiple of 128 in the model (or consume the padded array) to skip it.
        out = out[:, :N, :dim_out]
    return out


def _reference(ctx, x, w_layer, b_layer, w_gate, b_gate, w_bias):
    gate = jax.nn.sigmoid(jnp.einsum("bsc,oc->bso", ctx, w_gate) + b_gate)
    hbias = jnp.einsum("bsc,oc->bso", ctx, w_bias)
    h = jnp.einsum("bni,oi->bno", x, w_layer) + b_layer
    return h * gate + hbias


if __name__ == "__main__":
    B, N = 2, 8
    dim_in, dim_out, dim_ctx = 16, 32, 8

    key = jax.random.PRNGKey(0)
    k_x, k_c, k_wl, k_bl, k_wg, k_bg, k_wb = jax.random.split(key, 7)

    x = jax.random.normal(k_x, (B, N, dim_in), dtype=jnp.float32)
    ctx = jax.random.normal(k_c, (B, 1, dim_ctx), dtype=jnp.float32)

    # Deterministic parameter init (PyTorch-like uniform fan-in scaling).
    def _init_w(k, shape, fan_in):
        bound = 1.0 / (fan_in ** 0.5)
        return jax.random.uniform(k, shape, jnp.float32, -bound, bound)

    w_layer = _init_w(k_wl, (dim_out, dim_in), dim_in)
    b_layer = _init_w(k_bl, (dim_out,), dim_in)
    w_gate = _init_w(k_wg, (dim_out, dim_ctx), dim_ctx)
    b_gate = _init_w(k_bg, (dim_out,), dim_ctx)
    w_bias = _init_w(k_wb, (dim_out, dim_ctx), dim_ctx)

    ref = _reference(ctx, x, w_layer, b_layer, w_gate, b_gate, w_bias)

    # Exact f32 matmul path.
    params_f32 = prepare_csl_params(w_layer, b_layer, w_gate, b_gate, w_bias,
                                    compute_dtype=jnp.float32)
    out_f32 = jax.block_until_ready(concat_squash_linear(ctx, x, params_f32))
    assert out_f32.shape == (B, N, dim_out)
    assert jnp.allclose(out_f32, ref, atol=1e-5, rtol=1e-5)

    # Default path: bf16 MXU operands, f32 accumulation (production default).
    # Note: error includes input quantization of x to bf16, hence the looser tol.
    params_def = prepare_csl_params(w_layer, b_layer, w_gate, b_gate, w_bias)
    out_def = jax.block_until_ready(concat_squash_linear(ctx, x, params_def))
    assert out_def.shape == (B, N, dim_out)
    assert jnp.allclose(out_def.astype(jnp.float32), ref, atol=5e-2, rtol=5e-2)

    print("KERNEL_OK")
</pallas_src>

<mosaic_0001>
module attributes {stable_mosaic.version = 11 : i64} {
  func.func @_csl_kernel(%arg0: i32, %arg1: i32, %arg2: i32, %arg3: memref<1x8x16xf32, #tpu.memory_space<vmem>>, %arg4: memref<16x128xf32, #tpu.memory_space<vmem>>, %arg5: memref<1x2x128xf32, #tpu.memory_space<vmem>>, %arg6: memref<1x8x128xf32, #tpu.memory_space<vmem>>) attributes {dimension_semantics = [#tpu.dimension_semantics<parallel>, #tpu.dimension_semantics<parallel>, #tpu.dimension_semantics<parallel>], iteration_bounds = array<i64: 2, 1, 1>, scalar_prefetch = 0 : i64, scratch_operands = 0 : i64, tpu.core_type = #tpu.core_type<tc>, window_params = [{transform_indices = @transform_0, window_bounds = array<i64: 1, 8, 16>}, {pipeline_mode = #tpu.pipeline_mode<synchronous>, transform_indices = @transform_1, window_bounds = array<i64: 16, 128>}, {pipeline_mode = #tpu.pipeline_mode<synchronous>, transform_indices = @transform_2, window_bounds = array<i64: 1, 2, 128>}, {transform_indices = @transform_3, window_bounds = array<i64: 1, 8, 128>}]} {
    %c0 = arith.constant 0 : index
    %c0_0 = arith.constant 0 : index
    %c0_1 = arith.constant 0 : index
    %0 = vector.load %arg3[%c0, %c0_0, %c0_1] : memref<1x8x16xf32, #tpu.memory_space<vmem>>, vector<1x8x16xf32>
    %1 = vector.shape_cast %0 : vector<1x8x16xf32> to vector<8x16xf32>
    %c0_2 = arith.constant 0 : index
    %c0_3 = arith.constant 0 : index
    %2 = vector.load %arg4[%c0_2, %c0_3] : memref<16x128xf32, #tpu.memory_space<vmem>>, vector<16x128xf32>
    %cst = arith.constant dense<0.000000e+00> : vector<8x128xf32>
    %3 = tpu.matmul %1, %2, %cst {dimension_numbers = #tpu.dot_dimension_numbers<[1], [0], [0], [1], [0, 0, 1, 1], [], []>} : vector<8x16xf32>, vector<16x128xf32>, vector<8x128xf32> -> vector<8x128xf32>
    %c0_4 = arith.constant 0 : index
    %c0_5 = arith.constant 0 : index
    %c0_6 = arith.constant 0 : index
    %4 = vector.load %arg5[%c0_4, %c0_5, %c0_6] : memref<1x2x128xf32, #tpu.memory_space<vmem>>, vector<1x2x128xf32>
    %5 = vector.shape_cast %4 : vector<1x2x128xf32> to vector<2x128xf32>
    %6 = vector.extract_strided_slice %5 {offsets = [0, 0], sizes = [1, 128], strides = [1, 1]} : vector<2x128xf32> to vector<1x128xf32>
    %7 = vector.broadcast %6 : vector<1x128xf32> to vector<8x128xf32>
    %8 = arith.mulf %3, %7 : vector<8x128xf32>
    %9 = vector.extract_strided_slice %5 {offsets = [1, 0], sizes = [1, 128], strides = [1, 1]} : vector<2x128xf32> to vector<1x128xf32>
    %10 = vector.broadcast %9 : vector<1x128xf32> to vector<8x128xf32>
    %11 = arith.addf %8, %10 : vector<8x128xf32>
    %c0_7 = arith.constant 0 : index
    %c0_8 = arith.constant 0 : index
    %c0_9 = arith.constant 0 : index
    %12 = vector.load %arg6[%c0_7, %c0_8, %c0_9] : memref<1x8x128xf32, #tpu.memory_space<vmem>>, vector<1x8x128xf32>
    %13 = vector.shape_cast %12 : vector<1x8x128xf32> to vector<8x128xf32>
    %14 = vector.shape_cast %11 : vector<8x128xf32> to vector<1x8x128xf32>
    tpu.vector_store %arg6[%c0_7, %c0_8, %c0_9], %14 {strides = array<i32>} : memref<1x8x128xf32, #tpu.memory_space<vmem>>, vector<1x8x128xf32>,
    return
  }
  func.func @transform_0(%arg0: i32, %arg1: i32, %arg2: i32) -> (i32, i32, i32) {
    %c0_i32 = arith.constant 0 : i32
    %c0_i32_0 = arith.constant 0 : i32
    return %arg0, %arg2, %c0_i32 : i32, i32, i32
  }
  func.func @transform_1(%arg0: i32, %arg1: i32, %arg2: i32) -> (i32, i32) {
    %c0_i32 = arith.constant 0 : i32
    %c0_i32_0 = arith.constant 0 : i32
    return %c0_i32, %arg1 : i32, i32
  }
  func.func @transform_2(%arg0: i32, %arg1: i32, %arg2: i32) -> (i32, i32, i32) {
    %c0_i32 = arith.constant 0 : i32
    %c0_i32_0 = arith.constant 0 : i32
    return %arg0, %c0_i32, %arg1 : i32, i32, i32
  }
  func.func @transform_3(%arg0: i32, %arg1: i32, %arg2: i32) -> (i32, i32, i32) {
    %c0_i32 = arith.constant 0 : i32
    return %arg0, %arg2, %arg1 : i32, i32, i32
  }
}

</mosaic_0001>

<bundles_post_ra>
// kernel: tpu_custom_call.1
= control target key start
LH: loop header
LB: loop body
LE: loop exit
PB: predicated region body
PF: predicated region fallthrough
CT: control target
= control target key end

     0   :  { %8 = vsyncpa [#allocation3], 0  ;;  %s982_s0 = inlined_call_operand.hbm [shape: f32[2,8,16], index: 0, kind: input, shape index: {}]   ;;  %s983_s1 = inlined_call_operand.hbm [shape: f32[16,128], index: 1, kind: input, shape index: {}]   ;;  %s984_s2 = inlined_call_operand.hbm [shape: f32[2,2,128], index: 2, kind: input, shape index: {}]   ;;  %s985_s3 = inlined_call_operand.hbm [shape: f32[2,8,128], index: 3, kind: output, shape index: {}]  }
   0x1   :  { %10 = vsyncpa [#allocation3 + $0x1], 0 }
   0x2   :  { %11 = vsyncpa [#allocation6], 0 }
   0x3   :  { %12 = vsyncpa [#allocation4], 0 }
   0x4   :  { %14 = vsyncpa [#allocation4 + $0x1], 0  ;;  %s779_s12 = smov 0   ;;  %s781_s13 = smov 0  }
   0x5   :  { %s783_s14 = smov 0   ;;  %s785_s15 = smov 0  }
   0x6   :  { %s787_s16 = smov 0   ;;  %s789_s17 = smov 0  }
   0x7 LB: > { %s751_s18 = smov [#allocation5]   ;;  %s469_s20 = sadd.s32 4294967295, %s749_s17   ;;  %s749_s17 = sphi %s789_s17, %s20_s17   ;;  %s745_s16 = sphi %s787_s16, %s1010_s16   ;;  %s741_s15 = sphi %s785_s15, %s1009_s15   ;;  %s737_s14 = sphi %s783_s14, %s1008_s14   ;;  %s733_s13 = sphi %s781_s13, %s1007_s13   ;;  %s729_s12 = sphi %s779_s12, %s1006_s12  }
   0x8   : > { %s170_s19 = sshll.u32 %s751_s18, 4  ;;  %p471_p0 = scmp.ge.s32.totalorder %s749_s17, 1  ;;  %s171_s19 = int_to_ptr.vmem [resolvable:$true] %s170_s19 }
   0x9   : > { %p811_p1 = scmp.eq.s32.totalorder %s469_s20, 0  ;;  %p815_p2 = scmp.eq.s32.totalorder %s469_s20, 1 }
   0xa   : > { %p156_p3 = scmp.lt.s32.totalorder %s749_s17, 3  ;;  %s470_s25 = sadd.s32 4294967294, %s749_s17  }
   0xb   : > { %s991_s21 = scalar_select %p811_p1, 1, 0 }
   0xc   : > { %s992_s22 = scalar_select %p815_p2, 1, 0 }
   0xd   : > { %p820_p4 = pnand %p471_p0, %p156_p3  ;;  %p61_p8 = scmp.ne.s32.totalorder %s733_s13, %s729_s12 }
   0xe   : > { %s590_s26 = scalar_lea.vmem %s171_s19, 256  ;;  %p598_p13 = scmp.lt.s32.totalorder %s171_s19, %s171_s19 }
   0xf   : > { %s993_s23 = scalar_select %p820_p4, 1, 0 }
  0x10   : > { %p506_p6 = pneg %p820_p4  ;;  %p591_p10 = scmp.ne.s32.totalorder %s171_s19, %s590_s26 }
  0x11   : > { %p599_p0 = scmp.lt.s32.totalorder %s590_s26, %s590_s26 }
  0x12   : > { %p832_p7 = pnand %p506_p6, %p811_p1 }
  0x13   : > { %p600_p3 = por %p599_p0, %p598_p13 }
  0x14   : > { %p581_p9 = pneg %p832_p7 }
  0x16   : > { %p593_p11 = pnand %p591_p10, %p581_p9 }
  0x18   : > { %p594_p12 = pneg %p593_p11 }
  0x1a   : > { %p601_p5 = pnand %p600_p3, %p594_p12 }
  0x1c   : > { %604 = shalt.err (!%p601_p5)
}
  0x1d   : > { %s752_s27 = smov 128   ;;  %s753_s28 = smov 8  }
  0x1e   : > { %509 = dma.hbm_to_vmem [thread:$0]  (!%p832_p7), %s983_s1, 256, %s171_s19, [#allocation6], %s752_s27, %s752_s27, %s753_s28  }
  0x1f   : > { %p851_p9 = por %p811_p1, %p61_p8  ;;  %p149_p5 = scmp.eq.s32.totalorder %s470_s25, 1 }
  0x20   : > { %s473_s5 = sshll.u32 %s741_s15, 5  ;;  %s754_s10 = smov [#allocation7]  }
  0x21   : > { %s995_s4 = scalar_select %p851_p9, 1, 0 }
  0x22   : > { %p859_p10 = por %p149_p5, %p61_p8  ;;  %s185_s9 = scalar_lea.hbm %s984_s2, %s473_s5 }
  0x23   : > { %s187_s11 = sshll.u32 %s754_s10, 4  ;;  %p871_p7 = pnand %p506_p6, %p851_p9  ;;  %s188_s11 = int_to_ptr.vmem [resolvable:$true] %s187_s11 }
  0x24   : > { %s996_s6 = scalar_select %p859_p10, 1, 0 }
  0x25   : > { %s605_s19 = scalar_lea.hbm %s185_s9, 32  ;;  %p607_p11 = pneg %p871_p7 }
  0x26   : > { %p606_p8 = scmp.ne.s32.totalorder %s185_s9, %s605_s19  ;;  %s610_s25 = scalar_lea.hbm %s984_s2, 64 }
  0x27   : > { %p611_p0 = scmp.lt.s32.totalorder %s185_s9, %s984_s2  ;;  %p612_p6 = scmp.lt.s32.totalorder %s610_s25, %s605_s19 }
  0x28   : > { %p608_p12 = pnand %p607_p11, %p606_p8 }
  0x29   : > { %p613_p3 = por %p612_p6, %p611_p0 }
  0x2a   : > { %p609_p13 = pneg %p608_p12 }
  0x2c   : > { %p614_p5 = pnand %p613_p3, %p609_p13 }
  0x2e   : > { %617 = shalt.err (!%p614_p5)
}
  0x2f   : > { %s618_s28 = scalar_lea.vmem %s188_s11, 32  ;;  %p626_p4 = scmp.lt.s32.totalorder %s188_s11, %s188_s11 }
  0x30   : > { %p619_p10 = scmp.ne.s32.totalorder %s188_s11, %s618_s28  ;;  %p627_p2 = scmp.lt.s32.totalorder %s618_s28, %s618_s28 }
  0x32   : > { %p621_p1 = pnand %p619_p10, %p607_p11  ;;  %p628_p8 = por %p627_p2, %p626_p4 }
  0x34   : > { %p622_p9 = pneg %p621_p1 }
  0x36   : > { %p629_p12 = pnand %p628_p8, %p622_p9 }
  0x38   : > { %632 = shalt.err (!%p629_p12)
}
  0x39   : > { %512 = dma.hbm_to_vmem [thread:$0]  (!%p871_p7), %s185_s9, 32, %s188_s11, [#allocation6]  }
  0x3a   : > { %s39_s29 = sadd.s32 1, %s745_s16  ;;  %s48_s30 = sadd.s32 1, %s737_s14 }
  0x3b   : > { %p41_p1 = scmp.ge.s32.totalorder %s39_s29, 2  ;;  %p55_p2 = scmp.ne.s32.totalorder %s737_s14, %s733_s13 }
  0x3c   : > { %p56_p4 = scmp.eq.s32.totalorder %s749_s17, 0  ;;  %p522_p9 = scmp.lt.s32.totalorder %s749_s17, 2 }
  0x3d   : > { %s1012_s29 = smov (%p41_p1, %s39_s29), 0  ;;  %p998_p11 = scmp.ne.s32.totalorder %s992_s22, 0 }
  0x3e   : > { %p57_p10 = por %p56_p4, %p55_p2  ;;  %s43_s7 = ssub.s32 %s745_s16, %s1012_s29 }
  0x3f   : > { %p895_p13 = por %p998_p11, %p55_p2  ;;  %s198_s8 = sand.u32 1, %s737_s14  }
  0x40   : > { %p46_p0 = scmp.eq.s32.totalorder %s43_s7, 0  ;;  %s475_s9 = sshll.u32 %s198_s8, 3 }
  0x41   : > { %s476_s10 = sshll.u32 %s745_s16, 7  ;;  %s202_s24 = scalar_lea.vmem [#allocation2], %s475_s9 }
  0x42   : > { %s904_s11 = scalar_select %p46_p0, %s737_s14, %s48_s30  }
  0x43   : > { %s208_s20 = scalar_lea.hbm %s982_s0, %s476_s10  ;;  %s210_s25 = sshll.u32 %s202_s24, 4  ;;  %s211_s25 = int_to_ptr.vmem [resolvable:$true] %s210_s25 }
  0x44   : > { %p911_p7 = pnand %p522_p9, %p57_p10  ;;  %s199_s26 = scalar_lea.sflag [#allocation3], %s198_s8 }
  0x45   : > { %s646_s27 = scalar_lea.vmem %s211_s25, 128  ;;  %s755_s28 = smov [#allocation2]  }
  0x46   : > { %p635_p6 = pneg %p911_p7  ;;  %p647_p3 = scmp.ne.s32.totalorder %s211_s25, %s646_s27 }
  0x47   : > { %s651_s30 = sshll.u32 %s755_s28, 4  ;;  %s652_s30 = int_to_ptr.vmem [resolvable:$false] %s651_s30 }
  0x48   : > { %p649_p5 = pnand %p647_p3, %p635_p6  ;;  %s653_s7 = scalar_lea.vmem %s652_s30, 256 }
  0x49   : > { %p654_p12 = scmp.lt.s32.totalorder %s211_s25, %s652_s30  ;;  %p655_p1 = scmp.lt.s32.totalorder %s653_s7, %s646_s27 }
  0x4a   : > { %p650_p8 = pneg %p649_p5 }
  0x4b   : > { %p656_p2 = por %p655_p1, %p654_p12 }
  0x4d   : > { %p657_p4 = pnand %p656_p2, %p650_p8 }
  0x4f   : > { %660 = shalt.err (!%p657_p4)
}
  0x50   : > { %516 = dma.hbm_to_vmem [thread:$0]  (!%p911_p7), %s208_s20, 128, %s211_s25, %s199_s26  }
  0x51   : > { %p1001_p9 = scmp.ne.s32.totalorder %s993_s23, 0 }
  0x52   : > { %s922_s8 = sand.u32 (!%p1001_p9), 1, %s733_s13   ;;  %p1002_p10 = scmp.ne.s32.totalorder (!%p1001_p9), %s995_s4, 0 }
  0x53   : > { %219 = sbr.rel (%p1001_p9) target bundleno = 309 (0x135), region = 32  ;;  %s478_s9 = sshll.u32 (!%p1001_p9), %s922_s8, 3 }
  0x54   : > { %s222_s10 = scalar_lea.sflag (!%p1001_p9), [#allocation3], %s922_s8  ;;  %s225_s18 = scalar_lea.vmem (!%p1001_p9), [#allocation2], %s478_s9 }
  0x58   : > { %712 = dma.done.wait (%p1002_p10), %s222_s10, 128  }
  0x59   : > { %714 = vsyncadd (%p1002_p10), %s222_s10, 4294967168  ;;  %p1003_p11 = scmp.ne.s32.totalorder %s991_s21, 0 }
  0x5b   : > { %716 = dma.done.wait (%p1003_p11), [#allocation6], 256  }
  0x5c   : > { %718 = vsyncadd (%p1003_p11), [#allocation6], 4294967040 }
  0x5d   : > { %720 = dma.done.wait (%p1002_p10), [#allocation6], 32  }
  0x5e   : > { %722 = vsyncadd (%p1002_p10), [#allocation6], 4294967264  ;;  %v756_v0 = vmov 0.0   ;;  %vm757_vm0 = vmmov 0   ;;  %v258_v1 = vld [vmem:[#allocation5 + $0x8] sm:$0xff]  ;;  %v257_v2 = vld [vmem:[#allocation5] sm:$0xff]  ;;  %v334_v4 = vlaneseq }
  0x5f   : > { %489 = vmatprep.subr.mxu0 %v756_v0  ;;  %493 = vmatprep.mubr.msk.f32.mxu0 %vm757_vm0, %v756_v0  ;;  %v256_v3 = vld [vmem:[%s225_s18] sm:$0xff]  ;;  %vm259_vm1 = vcmask 130048   ;;  %s483_s21 = sshll.u32 %s741_s15, 7  ;;  %s255_s23 = scalar_lea.vmem [#allocation8], %s478_s9 }
  0x60   : > { %490 = vmatpush3.msra.mxu0 %v258_v1  ;;  %v335_v5 = vshrl.u32 %v334_v4, 7  ;;  %v333_v7 = vld [vmem:[#allocation7] sm:$0x3]  ;;  %s361_s4 = sshll.u32 %s255_s23, 4  ;;  %s359_s24 = scalar_lea.hbm %s985_s3, %s483_s21  ;;  %s362_s4 = int_to_ptr.vmem [resolvable:$true] %s361_s4 }
  0x61   : > { %491 = vmatprep.subr.mxu0 %v756_v0  ;;  %s346_s25 = scalar_lea.sflag [#allocation4], %s922_s8  ;;  %s661_s22 = scalar_lea.vmem %s362_s4, 128 }
  0x62   : > { %492 = vmatpush3.msra.mxu0 %v257_v2  ;;  %v336_v6 = vsub.s32 0, %v335_v5  ;;  %v341_v8 = vsub.s32 1, %v335_v5  ;;  %p662_p0 = scmp.ne.s32.totalorder %s362_s4, %s661_s22  ;;  %s758_s26 = smov [#allocation8]  }
  0x63   : > { %494 = vmatmul.mubr.msk.f32.vlgmr.msra.gmra.mxu0 %vm259_vm1, %v256_v3  ;;  %s665_s15 = sshll.u32 %s758_s26, 4  ;;  %s666_s15 = int_to_ptr.vmem [resolvable:$false] %s665_s15 }
  0x64   : > { %v337_v9 = vrot.slane %v333_v7, %v336_v6  ;;  %v342_v10 = vrot.slane %v333_v7, %v341_v8  ;;  %p663_p7 = pnand %p662_p0, %p895_p13  ;;  %s667_s27 = scalar_lea.vmem %s666_s15, 256 }
  0x65   : > { %p668_p3 = scmp.lt.s32.totalorder %s362_s4, %s666_s15  ;;  %p669_p5 = scmp.lt.s32.totalorder %s667_s27, %s661_s22 }
  0x66   : > { %p664_p6 = pneg %p663_p7 }
  0x67   : > { %p670_p8 = por %p669_p5, %p668_p3 }
  0x69   : > { %p671_p12 = pnand %p670_p8, %p664_p6 }
 0x123   : > { %v329_v11 = vpop.f32.mrf.mxu0 }
 0x124   : > { %v338_v12 = vmul.f32 %v337_v9, %v329_v11 }
 0x125   : > { %v495_v13 = vpop.f32.mrf.mxu0 }
 0x126   : > { %v343_v14 = vadd.f32 %v342_v10, %v338_v12 }
 0x128   : > { %344 = vst [vmem:[%s255_s23] sm:$0xff] %v343_v14 }
 0x129   : > { %674 = shalt.err (!%p671_p12)
}
 0x12a   : > { %s675_s28 = scalar_lea.hbm %s359_s24, 128  ;;  %s679_s8 = scalar_lea.hbm %s985_s3, 256 }
 0x12b   : > { %p676_p1 = scmp.ne.s32.totalorder %s359_s24, %s675_s28  ;;  %p680_p9 = scmp.lt.s32.totalorder %s359_s24, %s985_s3 }
 0x12c   : > { %p681_p10 = scmp.lt.s32.totalorder %s679_s8, %s675_s28 }
 0x12d   : > { %p677_p2 = pnand %p676_p1, %p895_p13 }
 0x12e   : > { %p682_p11 = por %p681_p10, %p680_p9 }
 0x12f   : > { %p678_p4 = pneg %p677_p2 }
 0x131   : > { %p683_p0 = pnand %p682_p11, %p678_p4 }
 0x133   : > { %686 = shalt.err (!%p683_p0)
}
 0x134   : > { %504 = dma.vmem_to_hbm [thread:$0]  (%p895_p13), %s362_s4, 128, %s359_s24, %s346_s25  }
 0x135 PF: > { %s373_s18 = sand.u32 1, %s729_s12   ;;  %p1004_p7 = scmp.ne.s32.totalorder %s996_s6, 0 }
 0x136   : > { %p1005_p6 = scmp.ge.s32.totalorder %s749_s17, 2  ;;  %s374_s21 = scalar_lea.sflag [#allocation4], %s373_s18 }
 0x138   : > { %p518_p3 = pnand %p1005_p6, %p1004_p7 }
 0x13a   : > { %p519_p5 = pneg %p518_p3 }
 0x13c   : > { %724 = dma.done.wait (%p519_p5), %s374_s21, 128  }
 0x13d   : > { %726 = vsyncadd (%p519_p5), %s374_s21, 4294967168  ;;  %s20_s17 = sadd.s32 1, %s749_s17   ;;  %s1006_s12 = smov %s733_s13 }
 0x13e   : > { %p17_p8 = scmp.ge.s32.totalorder %s20_s17, 4   ;;  %s1007_s13 = smov %s737_s14 }
 0x13f   : > { %s1008_s14 = smov %s904_s11  ;;  %s1009_s15 = smov %s745_s16 }
 0x140   : > { %s1010_s16 = smov %s1012_s29  ;;  %19 = sbr.rel (!%p17_p8) target bundleno = 7 (0x7), region = 87 }
 0x145   :  { %379 = vsyncpa [#allocation3], 1 }
 0x146   :  { %381 = vsyncpa [#allocation3 + $0x1], 1 }
 0x147   :  { %382 = vsyncpa [#allocation6], 1 }
 0x148   :  { %383 = vsyncpa [#allocation4], 1 }
 0x149   :  { %385 = vsyncpa [#allocation4 + $0x1], 1 }

</bundles_post_ra>
